<compile_context>
chip_gen: v6e
topology: v6e:2x2x1
jax: 0.10.0
libtpu: 0.0.40
codegen_flags: <defaults>
</compile_context>

<pallas_src>
import functools
import math

import jax
import jax.numpy as jnp
from jax.experimental import pallas as pl
from jax.experimental.pallas import tpu as pltpu


# -----------------------------------------------------------------------------
# VMEM sizing constants (portable across v5e / v6e / v7x)
# -----------------------------------------------------------------------------
_VMEM_LIMIT_BYTES = 48 << 20   # > v5e's 16 MiB / v6e's 32 MiB scoped defaults,
                               # < v7x's 64 MiB physical (headroom for compiler scratch)
_VMEM_BUDGET_BYTES = 40 << 20  # what the row-tile sizing targets


def _round_up(x, m):
    return ((x + m - 1) // m) * m


def _const_spec(shape):
    """BlockSpec for a block whose index never changes (weights / biases / LN params).
    Single-buffer it when the installed Pallas supports pipeline_mode — the block is
    identical every grid step, so double-buffering only burns VMEM."""
    index_map = lambda i: (0,) * len(shape)
    try:
        return pl.BlockSpec(shape, index_map, pipeline_mode=pl.Buffered(1))
    except (TypeError, AttributeError):
        return pl.BlockSpec(shape, index_map)


def _choose_row_tile(n_rows, bytes_per_row, *, budget_bytes, max_rows=1024,
                     sub=8, min_steps=2):
    """Largest sublane-aligned row tile whose live slabs fit `budget_bytes`, capped so
    the 1-D grid has >= `min_steps` steps (both v7x TensorCores get work)."""
    if n_rows < sub:
        return max(1, n_rows)                       # full-array block (== array dim)
    cap = max(sub, budget_bytes // max(1, bytes_per_row))
    tile = min(max_rows, cap, _round_up(n_rows, sub))
    tile = max(sub, (tile // sub) * sub)
    if n_rows >= min_steps * sub:
        tile = min(tile, max(sub, _round_up(-(-n_rows // min_steps), sub)))
    return tile


# -----------------------------------------------------------------------------
# Pallas kernels
# -----------------------------------------------------------------------------
def _ln_center_inv(x, eps):
    # Annotated-Transformer LayerNorm stats: unbiased (N-1) std, normalize by (std+eps).
    d = x.shape[-1]
    mean = jnp.mean(x, axis=-1, keepdims=True)
    xc = x - mean
    var = jnp.sum(xc * xc, axis=-1, keepdims=True) * (1.0 / (d - 1))
    inv = pl.reciprocal(jnp.sqrt(var) + eps, approx=True)   # EUP slot, off the VALU
    return xc, inv


def _layernorm_kernel(x_ref, a_ref, b_ref, o_ref, *, eps):
    # x_ref: (TR, D) rows; a_ref/b_ref: (1, D) scale/shift (resident across steps).
    x = x_ref[...].astype(jnp.float32)
    xc, inv = _ln_center_inv(x, eps)
    y = a_ref[...].astype(jnp.float32) * xc * inv + b_ref[...].astype(jnp.float32)
    o_ref[...] = y.astype(o_ref.dtype)


def _ln_matmul_kernel(x_ref, a_ref, b_ref, w_ref, bias_ref, o_ref, *, eps):
    # Fused: o = LN(x) @ W + bias.  W arrives in bf16; MXU accumulates in f32.
    x = x_ref[...].astype(jnp.float32)
    xc, inv = _ln_center_inv(x, eps)
    h = a_ref[...].astype(jnp.float32) * xc * inv + b_ref[...].astype(jnp.float32)
    y = jnp.dot(h.astype(jnp.bfloat16), w_ref[...],
                preferred_element_type=jnp.float32)
    o_ref[...] = (y + bias_ref[...].astype(jnp.float32)).astype(o_ref.dtype)


def _ln_ffn_residual_kernel(x_ref, ln_a_ref, ln_b_ref, w1_ref, b1_ref,
                            w2_ref, b2_ref, o_ref, *, eps):
    # Fused: o = x + relu(LN(x) @ W1 + b1) @ W2 + b2, x resident in VMEM.
    x = x_ref[...].astype(jnp.float32)                       # (TR, D)
    xc, inv = _ln_center_inv(x, eps)
    h = ln_a_ref[...].astype(jnp.float32) * xc * inv + ln_b_ref[...].astype(jnp.float32)
    z = jnp.dot(h.astype(jnp.bfloat16), w1_ref[...],         # bf16 MXU, f32 acc
                preferred_element_type=jnp.float32)
    z = jnp.maximum(z + b1_ref[...].astype(jnp.float32), 0.0)
    y = jnp.dot(z.astype(jnp.bfloat16), w2_ref[...],
                preferred_element_type=jnp.float32)
    y = y + b2_ref[...].astype(jnp.float32)
    o_ref[...] = (x + y).astype(o_ref.dtype)                  # residual add in-kernel


# -----------------------------------------------------------------------------
# Pallas wrappers
# -----------------------------------------------------------------------------
def _compiler_params():
    return pltpu.CompilerParams(dimension_semantics=("parallel",),
                                vmem_limit_bytes=_VMEM_LIMIT_BYTES)


def pallas_layernorm(x, ln_a, ln_b, eps=1e-6, row_tile=None):
    """LayerNorm over the last (hidden) axis of x (leading dims flattened)."""
    *lead, d = x.shape
    assert d > 1, "unbiased std needs at least 2 features"
    n = math.prod(lead) if lead else 1
    x2d = x.reshape(n, d)
    itemsize = jnp.dtype(x2d.dtype).itemsize
    if row_tile is None:
        per_row = 2 * 2 * d * itemsize + 4 * 4 * d            # dbl-buffered x/out + f32 temps
        row_tile = _choose_row_tile(n, per_row, budget_bytes=_VMEM_BUDGET_BYTES)
    out = pl.pallas_call(
        functools.partial(_layernorm_kernel, eps=eps),
        out_shape=jax.ShapeDtypeStruct((n, d), x.dtype),
        grid=(pl.cdiv(n, row_tile),),                          # partial last tile: Pallas masks it
        in_specs=[
            pl.BlockSpec((row_tile, d), lambda i: (i, 0)),     # streamed rows
            _const_spec((1, d)),                               # scale (single-buffered)
            _const_spec((1, d)),                               # shift
        ],
        out_specs=pl.BlockSpec((row_tile, d), lambda i: (i, 0)),
        compiler_params=_compiler_params(),
    )(x2d, ln_a.reshape(1, d).astype(jnp.float32), ln_b.reshape(1, d).astype(jnp.float32))
    return out.reshape(*lead, d)


def pallas_ln_matmul(x, ln_a, ln_b, w, b, eps=1e-6, row_tile=None):
    """Fused LN(x) @ W + b.  Used for the pre-attention LN + QKV (or Q) projections,
    removing the standalone-LN HBM round trip."""
    *lead, d = x.shape
    d_out = w.shape[1]
    assert d > 1
    n = math.prod(lead) if lead else 1
    x2d = x.reshape(n, d)
    itemsize = jnp.dtype(x2d.dtype).itemsize
    if row_tile is None:
        weight_bytes = 2 * d * d_out + 4 * (d_out + 2 * d)     # bf16 W + f32 params, single-buffered
        budget = max(_VMEM_BUDGET_BYTES - weight_bytes, 1 << 20)
        per_row = 2 * (d + d_out) * itemsize + 4 * (2 * d + d_out)
        row_tile = _choose_row_tile(n, per_row, budget_bytes=budget)
    out = pl.pallas_call(
        functools.partial(_ln_matmul_kernel, eps=eps),
        out_shape=jax.ShapeDtypeStruct((n, d_out), x.dtype),
        grid=(pl.cdiv(n, row_tile),),
        in_specs=[
            pl.BlockSpec((row_tile, d), lambda i: (i, 0)),     # x rows (streamed)
            _const_spec((1, d)),                               # LN scale
            _const_spec((1, d)),                               # LN shift
            _const_spec((d, d_out)),                           # W (resident, bf16)
            _const_spec((1, d_out)),                           # bias
        ],
        out_specs=pl.BlockSpec((row_tile, d_out), lambda i: (i, 0)),
        compiler_params=_compiler_params(),
    )(x2d,
      ln_a.reshape(1, d).astype(jnp.float32),
      ln_b.reshape(1, d).astype(jnp.float32),
      w.astype(jnp.bfloat16),
      b.reshape(1, d_out).astype(jnp.float32))
    return out.reshape(*lead, d_out)


def pallas_ln_ffn_residual(x, ln_a, ln_b, w1, b1, w2, b2, eps=1e-6, row_tile=None):
    """x + FFN(LayerNorm(x)) with FFN(h) = relu(h @ w1 + b1) @ w2 + b2, fully fused."""
    *lead, d = x.shape
    d_ff = w1.shape[1]
    assert d > 1
    n = math.prod(lead) if lead else 1
    x2d = x.reshape(n, d)
    itemsize = jnp.dtype(x2d.dtype).itemsize
    if row_tile is None:
        weight_bytes = 2 * (d * d_ff + d_ff * d) + 4 * (d_ff + 3 * d)  # bf16 W1/W2, single-buffered
        budget = max(_VMEM_BUDGET_BYTES - weight_bytes, 1 << 20)
        per_row = 2 * 2 * d * itemsize + 4 * (2 * d + 2 * d_ff)        # io slabs + f32 h/z temps
        row_tile = _choose_row_tile(n, per_row, budget_bytes=budget)
    out = pl.pallas_call(
        functools.partial(_ln_ffn_residual_kernel, eps=eps),
        out_shape=jax.ShapeDtypeStruct((n, d), x.dtype),
        grid=(pl.cdiv(n, row_tile),),
        in_specs=[
            pl.BlockSpec((row_tile, d), lambda i: (i, 0)),     # x rows (streamed)
            _const_spec((1, d)),                               # LN scale
            _const_spec((1, d)),                               # LN shift
            _const_spec((d, d_ff)),                            # W1 (resident, bf16)
            _const_spec((1, d_ff)),                            # b1
            _const_spec((d_ff, d)),                            # W2 (resident, bf16)
            _const_spec((1, d)),                               # b2
        ],
        out_specs=pl.BlockSpec((row_tile, d), lambda i: (i, 0)),
        compiler_params=_compiler_params(),
    )(x2d,
      ln_a.reshape(1, d).astype(jnp.float32),
      ln_b.reshape(1, d).astype(jnp.float32),
      w1.astype(jnp.bfloat16), b1.reshape(1, d_ff).astype(jnp.float32),
      w2.astype(jnp.bfloat16), b2.reshape(1, d).astype(jnp.float32))
    return out.reshape(*lead, d)


# TODO(synk): for very large d_ff (>= 4096) add a d_ff reduction grid axis so W1/W2
# and the (row_tile, d_ff) intermediate need not be fully resident (matters on v7x).


# -----------------------------------------------------------------------------
# Pure-JAX references for the Pallas ops (used for the correctness check)
# -----------------------------------------------------------------------------
def ref_layernorm(x, ln_a, ln_b, eps=1e-6):
    mean = jnp.mean(x, axis=-1, keepdims=True)
    std = jnp.std(x, axis=-1, keepdims=True, ddof=1)   # unbiased, like torch.std
    return ln_a * (x - mean) / (std + eps) + ln_b


def ref_ln_matmul(x, ln_a, ln_b, w, b, eps=1e-6):
    return jnp.dot(ref_layernorm(x, ln_a, ln_b, eps), w) + b


def ref_ln_ffn_residual(x, ln_a, ln_b, w1, b1, w2, b2, eps=1e-6):
    h = ref_layernorm(x, ln_a, ln_b, eps)
    z = jnp.maximum(jnp.dot(h, w1) + b1, 0.0)
    return x + jnp.dot(z, w2) + b2


PALLAS_OPS = {"ln": pallas_layernorm, "ln_matmul": pallas_ln_matmul,
              "ln_ffn_res": pallas_ln_ffn_residual}
REF_OPS = {"ln": ref_layernorm, "ln_matmul": ref_ln_matmul,
           "ln_ffn_res": ref_ln_ffn_residual}


# -----------------------------------------------------------------------------
# Plain-JAX pieces (embeddings, attention core, generator) and EncoderDecoder glue
# -----------------------------------------------------------------------------
def positional_encoding(max_len, d_model):
    position = jnp.arange(max_len, dtype=jnp.float32)[:, None]
    div_term = jnp.exp(jnp.arange(0, d_model, 2, dtype=jnp.float32)
                       * (-math.log(10000.0) / d_model))
    pe = jnp.zeros((max_len, d_model), jnp.float32)
    pe = pe.at[:, 0::2].set(jnp.sin(position * div_term))
    pe = pe.at[:, 1::2].set(jnp.cos(position * div_term))
    return pe


def embed(p, tokens, d_model):
    # Embeddings * sqrt(d_model) + PositionalEncoding (dropout = eval identity).
    x = p["table"][tokens] * math.sqrt(d_model)
    return x + p["pe"][None, : tokens.shape[1], :]


def _split_heads(x, n_heads):
    b, s, d = x.shape
    return x.reshape(b, s, n_heads, d // n_heads).transpose(0, 2, 1, 3)


def attention_core(p, q_proj, k_proj, v_proj, mask, n_heads):
    # TODO(synk): scores/softmax stay in plain JAX; a flash-attention Pallas kernel
    # (online softmax over KV tiles) would replace this for long sequences.
    bsz, sq, d = q_proj.shape
    d_k = d // n_heads
    q = _split_heads(q_proj, n_heads)
    k = _split_heads(k_proj, n_heads)
    v = _split_heads(v_proj, n_heads)
    scores = jnp.einsum("bhqd,bhkd->bhqk", q, k) / math.sqrt(d_k)
    if mask is not None:
        scores = jnp.where(mask, scores, -1e9)
    attn = jax.nn.softmax(scores, axis=-1)
    out = jnp.einsum("bhqk,bhkd->bhqd", attn, v)
    out = out.transpose(0, 2, 1, 3).reshape(bsz, sq, d)
    return jnp.dot(out, p["wo"]) + p["bo"]


def generator_fn(p, x):
    return jax.nn.log_softmax(jnp.dot(x, p["w"]) + p["b"], axis=-1)


def _self_attn_sublayer(x, ln_a, ln_b, ap, mask, ops, n_heads, eps):
    # Fused LN -> concatenated QKV projection (one Pallas kernel, no LN HBM trip),
    # then plain-JAX attention core; residual add fuses into the output projection.
    d = x.shape[-1]
    wqkv = jnp.concatenate([ap["wq"], ap["wk"], ap["wv"]], axis=1)
    bqkv = jnp.concatenate([ap["bq"], ap["bk"], ap["bv"]])
    qkv = ops["ln_matmul"](x, ln_a, ln_b, wqkv, bqkv, eps)
    q, k, v = qkv[..., :d], qkv[..., d:2 * d], qkv[..., 2 * d:]
    return x + attention_core(ap, q, k, v, mask, n_heads)


def encoder_layer(p, x, src_mask, ops, n_heads, eps):
    x = _self_attn_sublayer(x, p["ln0_a"], p["ln0_b"], p["self_attn"],
                            src_mask, ops, n_heads, eps)
    f = p["ffn"]
    return ops["ln_ffn_res"](x, p["ln1_a"], p["ln1_b"],
                             f["w1"], f["b1"], f["w2"], f["b2"], eps)


def decoder_layer(p, x, memory, src_mask, tgt_mask, ops, n_heads, eps):
    x = _self_attn_sublayer(x, p["ln0_a"], p["ln0_b"], p["self_attn"],
                            tgt_mask, ops, n_heads, eps)
    # Cross-attention: query path gets the fused LN -> Q projection; key/value come
    # from un-normalized encoder memory, so those projections stay plain JAX.
    sp = p["src_attn"]
    q = ops["ln_matmul"](x, p["ln1_a"], p["ln1_b"], sp["wq"], sp["bq"], eps)
    k = jnp.dot(memory, sp["wk"]) + sp["bk"]
    v = jnp.dot(memory, sp["wv"]) + sp["bv"]
    x = x + attention_core(sp, q, k, v, src_mask, n_heads)
    f = p["ffn"]
    return ops["ln_ffn_res"](x, p["ln2_a"], p["ln2_b"],
                             f["w1"], f["b1"], f["w2"], f["b2"], eps)


def encode(params, src, src_mask, ops, n_heads, eps=1e-6):
    d = params["src_embed"]["table"].shape[-1]
    x = embed(params["src_embed"], src, d)
    for lp in params["encoder"]["layers"]:
        x = encoder_layer(lp, x, src_mask, ops, n_heads, eps)
    return ops["ln"](x, params["encoder"]["norm_a"], params["encoder"]["norm_b"], eps)


def decode(params, memory, src_mask, tgt, tgt_mask, ops, n_heads, eps=1e-6):
    d = params["tgt_embed"]["table"].shape[-1]
    x = embed(params["tgt_embed"], tgt, d)
    for lp in params["decoder"]["layers"]:
        x = decoder_layer(lp, x, memory, src_mask, tgt_mask, ops, n_heads, eps)
    x = ops["ln"](x, params["decoder"]["norm_a"], params["decoder"]["norm_b"], eps)
    # Per this module's `decode`, the generator is applied to the decoder output.
    return generator_fn(params["generator"], x)


def encoder_decoder_forward(params, src, tgt, src_mask, tgt_mask, *, ops, n_heads, eps=1e-6):
    """EncoderDecoder.forward: decode(encode(src, src_mask), src_mask, tgt, tgt_mask)."""
    memory = encode(params, src, src_mask, ops, n_heads, eps)
    return decode(params, memory, src_mask, tgt, tgt_mask, ops, n_heads, eps)


# -----------------------------------------------------------------------------
# Parameter init
# -----------------------------------------------------------------------------
def _init_linear(key, fan_in, fan_out, scale=0.05):
    kw, kb = jax.random.split(key)
    return (scale * jax.random.normal(kw, (fan_in, fan_out), jnp.float32),
            scale * jax.random.normal(kb, (fan_out,), jnp.float32))


def _init_attn(key, d):
    p = {}
    for name, k in zip("qkvo", jax.random.split(key, 4)):
        w, b = _init_linear(k, d, d)
        p["w" + name], p["b" + name] = w, b
    return p


def _init_ffn(key, d, d_ff):
    k1, k2 = jax.random.split(key)
    w1, b1 = _init_linear(k1, d, d_ff)
    w2, b2 = _init_linear(k2, d_ff, d)
    return {"w1": w1, "b1": b1, "w2": w2, "b2": b2}


def _init_encoder_layer(key, d, d_ff):
    k1, k2 = jax.random.split(key)
    return {"ln0_a": jnp.ones((d,)), "ln0_b": jnp.zeros((d,)),
            "self_attn": _init_attn(k1, d),
            "ln1_a": jnp.ones((d,)), "ln1_b": jnp.zeros((d,)),
            "ffn": _init_ffn(k2, d, d_ff)}


def _init_decoder_layer(key, d, d_ff):
    k1, k2, k3 = jax.random.split(key, 3)
    return {"ln0_a": jnp.ones((d,)), "ln0_b": jnp.zeros((d,)),
            "self_attn": _init_attn(k1, d),
            "ln1_a": jnp.ones((d,)), "ln1_b": jnp.zeros((d,)),
            "src_attn": _init_attn(k2, d),
            "ln2_a": jnp.ones((d,)), "ln2_b": jnp.zeros((d,)),
            "ffn": _init_ffn(k3, d, d_ff)}


def init_params(key, vocab, d, d_ff, n_layers, max_len):
    keys = jax.random.split(key, 3 + 2 * n_layers)
    pe = positional_encoding(max_len, d)
    params = {
        "src_embed": {"table": 0.05 * jax.random.normal(keys[0], (vocab, d), jnp.float32), "pe": pe},
        "tgt_embed": {"table": 0.05 * jax.random.normal(keys[1], (vocab, d), jnp.float32), "pe": pe},
        "encoder": {"layers": [_init_encoder_layer(keys[2 + i], d, d_ff) for i in range(n_layers)],
                    "norm_a": jnp.ones((d,)), "norm_b": jnp.zeros((d,))},
        "decoder": {"layers": [_init_decoder_layer(keys[2 + n_layers + i], d, d_ff)
                               for i in range(n_layers)],
                    "norm_a": jnp.ones((d,)), "norm_b": jnp.zeros((d,))},
    }
    wg, bg = _init_linear(keys[2 + 2 * n_layers], d, vocab)
    params["generator"] = {"w": wg, "b": bg}
    return params


# -----------------------------------------------------------------------------
# Demo / correctness check
# -----------------------------------------------------------------------------
if __name__ == "__main__":
    # Small but lane-aligned shapes: hidden=128 keeps every Pallas output lane-dense.
    # (For peak MXU efficiency on v6e/v7x, real models should use d % 256 == 0.)
    B, S, D, D_FF, H, N_LAYERS, VOCAB = 2, 8, 128, 256, 4, 2, 16

    key = jax.random.PRNGKey(0)
    kp, ks, kt, kx = jax.random.split(key, 4)

    params = init_params(kp, VOCAB, D, D_FF, N_LAYERS, max_len=S)
    src = jax.random.randint(ks, (B, S), 0, VOCAB)
    tgt = jax.random.randint(kt, (B, S), 0, VOCAB)
    src_mask = jnp.ones((B, 1, 1, S), dtype=bool)
    tgt_mask = jnp.broadcast_to(jnp.tril(jnp.ones((S, S), dtype=bool)), (B, 1, S, S))

    # Unit checks of each Pallas kernel against pure JAX (bf16 MXU + approx recip
    # introduce ~1e-3-level relative error; tolerances chosen accordingly).
    x_test = jax.random.normal(kx, (B, S, D), jnp.float32)
    a1, b1_ = jnp.ones((D,)), jnp.zeros((D,))
    ln_out = jax.block_until_ready(pallas_layernorm(x_test, a1, b1_))
    assert jnp.allclose(ln_out, ref_layernorm(x_test, a1, b1_), atol=1e-2, rtol=1e-2), \
        "layernorm kernel mismatch"

    f0 = params["encoder"]["layers"][0]["ffn"]
    ffn_out = jax.block_until_ready(
        pallas_ln_ffn_residual(x_test, a1, b1_, f0["w1"], f0["b1"], f0["w2"], f0["b2"]))
    assert jnp.allclose(ffn_out,
                        ref_ln_ffn_residual(x_test, a1, b1_, f0["w1"], f0["b1"], f0["w2"], f0["b2"]),
                        atol=2e-2, rtol=2e-2), "fused LN-FFN-residual kernel mismatch"

    ap0 = params["encoder"]["layers"][0]["self_attn"]
    wqkv = jnp.concatenate([ap0["wq"], ap0["wk"], ap0["wv"]], axis=1)
    bqkv = jnp.concatenate([ap0["bq"], ap0["bk"], ap0["bv"]])
    qkv_out = jax.block_until_ready(pallas_ln_matmul(x_test, a1, b1_, wqkv, bqkv))
    assert jnp.allclose(qkv_out, ref_ln_matmul(x_test, a1, b1_, wqkv, bqkv),
                        atol=2e-2, rtol=2e-2), "fused LN-QKV kernel mismatch"

    # Full EncoderDecoder forward with the Pallas kernels on the hot path.
    pallas_fwd = jax.jit(functools.partial(encoder_decoder_forward,
                                           ops=PALLAS_OPS, n_heads=H))
    out = jax.block_until_ready(pallas_fwd(params, src, tgt, src_mask, tgt_mask))

    # Pure-JAX reference of the whole forward (same params, exact f32 math).
    ref = encoder_decoder_forward(params, src, tgt, src_mask, tgt_mask,
                                  ops=REF_OPS, n_heads=H)

    assert out.shape == (B, S, VOCAB)
    assert bool(jnp.all(jnp.isfinite(out)))
    assert jnp.allclose(out, ref, atol=5e-2, rtol=5e-2), "mismatch vs pure-JAX reference"

    print("KERNEL_OK")
</pallas_src>

<mosaic_0001>
module attributes {stable_mosaic.version = 11 : i64} {
  func.func @_layernorm_kernel(%arg0: i32, %arg1: memref<8x128xf32, #tpu.memory_space<vmem>>, %arg2: memref<1x128xf32, #tpu.memory_space<vmem>>, %arg3: memref<1x128xf32, #tpu.memory_space<vmem>>, %arg4: memref<8x128xf32, #tpu.memory_space<vmem>>) attributes {dimension_semantics = [#tpu.dimension_semantics<parallel>], iteration_bounds = array<i64: 2>, scalar_prefetch = 0 : i64, scratch_operands = 0 : i64, tpu.core_type = #tpu.core_type<tc>, window_params = [{transform_indices = @transform_0, window_bounds = array<i64: 8, 128>}, {pipeline_mode = #tpu.pipeline_mode<synchronous>, transform_indices = @transform_1, window_bounds = array<i64: 1, 128>}, {pipeline_mode = #tpu.pipeline_mode<synchronous>, transform_indices = @transform_2, window_bounds = array<i64: 1, 128>}, {transform_indices = @transform_3, window_bounds = array<i64: 8, 128>}]} {
    %c0 = arith.constant 0 : index
    %c0_0 = arith.constant 0 : index
    %0 = vector.load %arg1[%c0, %c0_0] : memref<8x128xf32, #tpu.memory_space<vmem>>, vector<8x128xf32>
    %cst = arith.constant dense<0.000000e+00> : vector<8xf32>
    %1 = vector.multi_reduction <add>, %0, %cst [1] : vector<8x128xf32> to vector<8xf32>
    %2 = vector.shape_cast %1 : vector<8xf32> to vector<8x1xf32>
    %cst_1 = arith.constant 1.280000e+02 : f32
    %3 = vector.broadcast %cst_1 : f32 to vector<8x1xf32>
    %4 = arith.divf %2, %3 : vector<8x1xf32>
    %5 = vector.broadcast %4 : vector<8x1xf32> to vector<8x128xf32>
    %6 = arith.subf %0, %5 : vector<8x128xf32>
    %7 = arith.mulf %6, %6 : vector<8x128xf32>
    %cst_2 = arith.constant dense<0.000000e+00> : vector<8xf32>
    %8 = vector.multi_reduction <add>, %7, %cst_2 [1] : vector<8x128xf32> to vector<8xf32>
    %9 = vector.shape_cast %8 : vector<8xf32> to vector<8x1xf32>
    %cst_3 = arith.constant 0.00787401571 : f32
    %10 = vector.broadcast %cst_3 : f32 to vector<8x1xf32>
    %11 = arith.mulf %9, %10 : vector<8x1xf32>
    %12 = math.sqrt %11 : vector<8x1xf32>
    %cst_4 = arith.constant 9.99999997E-7 : f32
    %13 = vector.broadcast %cst_4 : f32 to vector<8x1xf32>
    %14 = arith.addf %12, %13 : vector<8x1xf32>
    %15 = tpu.reciprocal %14 {approx = true} : vector<8x1xf32> -> vector<8x1xf32>
    %c0_5 = arith.constant 0 : index
    %c0_6 = arith.constant 0 : index
    %16 = vector.load %arg2[%c0_5, %c0_6] : memref<1x128xf32, #tpu.memory_space<vmem>>, vector<1x128xf32>
    %17 = vector.broadcast %16 : vector<1x128xf32> to vector<8x128xf32>
    %18 = arith.mulf %17, %6 : vector<8x128xf32>
    %19 = vector.broadcast %15 : vector<8x1xf32> to vector<8x128xf32>
    %20 = arith.mulf %18, %19 : vector<8x128xf32>
    %c0_7 = arith.constant 0 : index
    %c0_8 = arith.constant 0 : index
    %21 = vector.load %arg3[%c0_7, %c0_8] : memref<1x128xf32, #tpu.memory_space<vmem>>, vector<1x128xf32>
    %22 = vector.broadcast %21 : vector<1x128xf32> to vector<8x128xf32>
    %23 = arith.addf %20, %22 : vector<8x128xf32>
    %c0_9 = arith.constant 0 : index
    %c0_10 = arith.constant 0 : index
    %24 = vector.load %arg4[%c0_9, %c0_10] : memref<8x128xf32, #tpu.memory_space<vmem>>, vector<8x128xf32>
    tpu.vector_store %arg4[%c0_9, %c0_10], %23 {strides = array<i32>} : memref<8x128xf32, #tpu.memory_space<vmem>>, vector<8x128xf32>,
    return
  }
  func.func @transform_0(%arg0: i32) -> (i32, i32) {
    %c0_i32 = arith.constant 0 : i32
    %c0_i32_0 = arith.constant 0 : i32
    return %arg0, %c0_i32 : i32, i32
  }
  func.func @transform_1(%arg0: i32) -> (i32, i32) {
    %c0_i32 = arith.constant 0 : i32
    %c0_i32_0 = arith.constant 0 : i32
    %c0_i32_1 = arith.constant 0 : i32
    return %c0_i32, %c0_i32_0 : i32, i32
  }
  func.func @transform_2(%arg0: i32) -> (i32, i32) {
    %c0_i32 = arith.constant 0 : i32
    %c0_i32_0 = arith.constant 0 : i32
    %c0_i32_1 = arith.constant 0 : i32
    return %c0_i32, %c0_i32_0 : i32, i32
  }
  func.func @transform_3(%arg0: i32) -> (i32, i32) {
    %c0_i32 = arith.constant 0 : i32
    %c0_i32_0 = arith.constant 0 : i32
    return %arg0, %c0_i32 : i32, i32
  }
}

</mosaic_0001>

<bundles_post_ra>
// kernel: tpu_custom_call.1
= control target key start
LH: loop header
LB: loop body
LE: loop exit
PB: predicated region body
PF: predicated region fallthrough
CT: control target
= control target key end

     0   :  { %8 = vsyncpa [#allocation3], 0  ;;  %s634_s0 = inlined_call_operand.hbm [shape: f32[16,128], index: 0, kind: input, shape index: {}]   ;;  %s635_s1 = inlined_call_operand.vmem [shape: f32[1,128], index: 1, kind: input, shape index: {}]   ;;  %s636_s2 = inlined_call_operand.vmem [shape: f32[1,128], index: 2, kind: input, shape index: {}]   ;;  %s637_s3 = inlined_call_operand.hbm [shape: f32[16,128], index: 3, kind: output, shape index: {}]  }
   0x1   :  { %10 = vsyncpa [#allocation3 + $0x1], 0 }
   0x2   :  { %11 = vsyncpa [#allocation4], 0 }
   0x3   :  { %13 = vsyncpa [#allocation4 + $0x1], 0  ;;  %s487_s12 = smov 0   ;;  %s489_s13 = smov 0  }
   0x4   :  { %s491_s14 = smov 0   ;;  %s493_s15 = smov 0  }
   0x5 LB: > { %s508_s16 = sadd.s32 4294967295, %s463_s15   ;;  %s307_s17 = sadd.s32 4294967294, %s463_s15   ;;  %s463_s15 = sphi %s493_s15, %s654_s15   ;;  %s459_s14 = sphi %s491_s14, %s653_s14   ;;  %s455_s13 = sphi %s489_s13, %s652_s13   ;;  %s451_s12 = sphi %s487_s12, %s651_s12  }
   0x6   : > { %s512_s18 = sadd.s32 1, %s463_s15   ;;  %s26_s19 = sadd.s32 1, %s459_s14 }
   0x7   : > { %s23_s20 = ssub.s32 %s463_s15, %s512_s18  ;;  %p33_p0 = scmp.ne.s32.totalorder %s459_s14, %s455_s13 }
   0x8   : > { %p24_p1 = scmp.eq.s32.totalorder %s23_s20, 0  ;;  %p34_p2 = scmp.eq.s32.totalorder %s463_s15, 0 }
   0x9   : > { %p39_p3 = scmp.ne.s32.totalorder %s455_s13, %s451_s12  ;;  %p40_p4 = scmp.eq.s32.totalorder %s508_s16, 0 }
   0xa   : > { %s524_s21 = scalar_select %p24_p1, %s459_s14, %s26_s19  }
   0xb   : > { %p526_p5 = por %p34_p2, %p33_p0  ;;  %p530_p6 = por %p40_p4, %p39_p3 }
   0xc   : > { %p105_p7 = scmp.eq.s32.totalorder %s508_s16, 1  ;;  %p111_p8 = scmp.eq.s32.totalorder %s307_s17, 1 }
   0xd   : > { %s641_s23 = scalar_select %p530_p6, 1, 0 }
   0xe   : > { %p333_p10 = scmp.lt.s32.totalorder %s463_s15, 2  ;;  %p537_p11 = por %p105_p7, %p33_p0 }
   0xf   : > { %p541_p12 = por %p111_p8, %p39_p3  ;;  %s137_s26 = sand.u32 1, %s459_s14  }
  0x10   : > { %s642_s24 = scalar_select %p537_p11, 1, 0 }
  0x11   : > { %s643_s25 = scalar_select %p541_p12, 1, 0 }
  0x12   : > { %s311_s27 = sshll.u32 %s463_s15, 7  ;;  %s310_s28 = sshll.u32 %s137_s26, 3 }
  0x13   : > { %s550_s4 = scalar_lea.hbm %s634_s0, %s311_s27  ;;  %s141_s5 = scalar_lea.vmem [#allocation2], %s310_s28 }
  0x14   : > { %s148_s6 = sshll.u32 %s141_s5, 4  ;;  %p554_p13 = pnand %p333_p10, %p526_p5  ;;  %s558_s6 = int_to_ptr.vmem [resolvable:$true] %s148_s6 }
  0x15   : > { %s138_s8 = scalar_lea.sflag [#allocation3], %s137_s26  ;;  %s371_s9 = scalar_lea.hbm %s550_s4, 128 }
  0x16   : > { %p372_p2 = scmp.ne.s32.totalorder %s550_s4, %s371_s9  ;;  %p373_p3 = pneg %p554_p13 }
  0x17   : > { %s376_s17 = scalar_lea.hbm %s634_s0, 256  ;;  %p377_p5 = scmp.lt.s32.totalorder %s550_s4, %s634_s0 }
  0x18   : > { %p374_p4 = pnand %p373_p3, %p372_p2  ;;  %p378_p8 = scmp.lt.s32.totalorder %s376_s17, %s371_s9 }
  0x1a   : > { %p375_p7 = pneg %p374_p4  ;;  %p379_p10 = por %p378_p8, %p377_p5 }
  0x1c   : > { %p380_p9 = pnand %p379_p10, %p375_p7 }
  0x1e   : > { %383 = shalt.err (!%p380_p9)
}
  0x1f   : > { %s384_s22 = scalar_lea.vmem %s558_s6, 128  ;;  %s465_s26 = smov [#allocation2]  }
  0x20   : > { %p385_p0 = scmp.ne.s32.totalorder %s558_s6, %s384_s22  ;;  %s389_s27 = sshll.u32 %s465_s26, 4  ;;  %s390_s27 = int_to_ptr.vmem [resolvable:$false] %s389_s27 }
  0x21   : > { %s391_s28 = scalar_lea.vmem %s390_s27, 256  ;;  %p392_p4 = scmp.lt.s32.totalorder %s558_s6, %s390_s27 }
  0x22   : > { %p387_p1 = pnand %p385_p0, %p373_p3  ;;  %p393_p12 = scmp.lt.s32.totalorder %s391_s28, %s384_s22 }
  0x24   : > { %p388_p2 = pneg %p387_p1  ;;  %p394_p11 = por %p393_p12, %p392_p4 }
  0x26   : > { %p395_p6 = pnand %p394_p11, %p388_p2 }
  0x28   : > { %398 = shalt.err (!%p395_p6)
}
  0x29   : > { %328 = dma.hbm_to_vmem [thread:$0]  (!%p554_p13), %s550_s4, 128, %s558_s6, %s138_s8  }
  0x2a   : > { %p645_p9 = scmp.lt.s32.totalorder %s463_s15, 3  ;;  %p646_p7 = scmp.ge.s32.totalorder %s463_s15, 1 }
  0x2c   : > { %p154_p0 = pnand %p646_p7, %p645_p9 }
  0x2d   : > { %s585_s29 = sand.u32 (!%p154_p0), 1, %s455_s13   ;;  %p647_p6 = scmp.ne.s32.totalorder (!%p154_p0), %s641_s23, 0 }
  0x2e   : > { %157 = sbr.rel (%p154_p0) target bundleno = 388 (0x184), region = 32  ;;  %s313_s30 = sshll.u32 (!%p154_p0), %s585_s29, 3 }
  0x2f   : > { %s160_s5 = scalar_lea.sflag (!%p154_p0), [#allocation3], %s585_s29  ;;  %s163_s9 = scalar_lea.vmem (!%p154_p0), [#allocation2], %s313_s30 }
  0x33   : > { %442 = dma.done.wait (%p647_p6), %s160_s5, 128  }
  0x34   : > { %444 = vsyncadd (%p647_p6), %s160_s5, 4294967168  ;;  %v186_v0 = vld [vmem:[%s163_s9] sm:$0xff]  ;;  %s318_s8 = sshll.u32 %s508_s16, 7  ;;  %s185_s10 = scalar_lea.vmem [#allocation5], %s313_s30 }
  0x35   : > { %187 = vadd.xlane.f32.xlu0 %v186_v0  ;;  %v315_v13 = vld [vmem:[%s635_s1] ss:$0 sm:$0xff]  ;;  %s237_s11 = sshll.u32 %s185_s10, 4  ;;  %s235_s20 = scalar_lea.hbm %s637_s3, %s318_s8  ;;  %s238_s11 = int_to_ptr.vmem [resolvable:$true] %s237_s11 }
  0x36   : > { %v316_v16 = vld [vmem:[%s636_s2] ss:$0 sm:$0xff]  ;;  %s224_s22 = scalar_lea.sflag [#allocation4], %s585_s29  ;;  %s399_s26 = scalar_lea.vmem %s238_s11, 128 }
  0x37   : > { %p400_p11 = scmp.ne.s32.totalorder %s238_s11, %s399_s26  ;;  %p648_p12 = scmp.ne.s32.totalorder %s642_s24, 0 }
  0x38   : > { %s466_s27 = smov [#allocation5]  }
  0x39   : > { %p401_p13 = pnand %p400_p11, %p648_p12  ;;  %s403_s28 = sshll.u32 %s466_s27, 4  ;;  %s404_s28 = int_to_ptr.vmem [resolvable:$false] %s403_s28 }
  0x3a   : > { %s405_s16 = scalar_lea.vmem %s404_s28, 256  ;;  %p406_p3 = scmp.lt.s32.totalorder %s238_s11, %s404_s28 }
  0x3b   : > { %p402_p1 = pneg %p401_p13  ;;  %p407_p5 = scmp.lt.s32.totalorder %s405_s16, %s399_s26 }
  0x3d   : > { %p408_p8 = por %p407_p5, %p406_p3 }
  0x3f   : > { %p409_p10 = pnand %p408_p8, %p402_p1 }
  0xbe   : > { %v188_v1 = vpop.xlane.xlu0 %187 }
  0xbf   : > { %v190_v2 = vmul.f32 0.0078125, %v188_v1 }
  0xc1   : > { %v191_v3 = vsub.f32 %v186_v0, %v190_v2 }
  0xc3   : > { %v192_v4 = vmul.f32 %v191_v3, %v191_v3  ;;  %v212_v14 = vmul.f32 %v315_v13, %v191_v3 }
  0xc5   : > { %193 = vadd.xlane.f32.xlu0 %v192_v4 }
 0x14e   : > { %v194_v5 = vpop.xlane.xlu0 %193 }
 0x14f   : > { %v195_v6 = vmul.f32 0.007874016, %v194_v5 }
 0x151   : > { %367 = vrsqrt.f32 %v195_v6  ;;  %vm198_vm0 = vcmp.eq.f32.partialorder %v195_v6, inf  ;;  %v201_v9 = vand.u32 2147483648, %v195_v6  ;;  %vm200_vm1 = vcmp.eq.f32.partialorder %v195_v6, 0.0 }
 0x15e   : > { %v368_v7 = vpop.eup %367 }
 0x15f   : > { %v197_v8 = vmul.f32 %v368_v7, %v195_v6 }
 0x161   : > { %v199_v10 = vsel %vm198_vm0, %v195_v6, %v197_v8 }
 0x162   : > { %v202_v11 = vsel %vm200_vm1, %v201_v9, %v199_v10 }
 0x163   : > { %v203_v12 = vadd.f32 1e-06, %v202_v11 }
 0x165   : > { %369 = vrcp.f32 %v203_v12 }
 0x172   : > { %v370_v15 = vpop.eup %369 }
 0x173   : > { %v213_v17 = vmul.f32 %v370_v15, %v212_v14 }
 0x175   : > { %v221_v18 = vadd.f32 %v316_v16, %v213_v17 }
 0x177   : > { %222 = vst [vmem:[%s185_s10] sm:$0xff] %v221_v18 }
 0x178   : > { %412 = shalt.err (!%p409_p10)
}
 0x179   : > { %s413_s30 = scalar_lea.hbm %s235_s20, 128  ;;  %s417_s9 = scalar_lea.hbm %s637_s3, 256 }
 0x17a   : > { %p414_p2 = scmp.ne.s32.totalorder %s235_s20, %s413_s30  ;;  %p418_p7 = scmp.lt.s32.totalorder %s235_s20, %s637_s3 }
 0x17b   : > { %p419_p0 = scmp.lt.s32.totalorder %s417_s9, %s413_s30 }
 0x17c   : > { %p415_p4 = pnand %p414_p2, %p648_p12 }
 0x17d   : > { %p420_p6 = por %p419_p0, %p418_p7 }
 0x17e   : > { %p416_p9 = pneg %p415_p4 }
 0x180   : > { %p421_p11 = pnand %p420_p6, %p416_p9 }
 0x182   : > { %424 = shalt.err (!%p421_p11)
}
 0x183   : > { %323 = dma.vmem_to_hbm [thread:$0]  (%p648_p12), %s238_s11, 128, %s235_s20, %s224_s22  }
 0x184 PF: > { %s249_s6 = sand.u32 1, %s451_s12   ;;  %p649_p13 = scmp.ne.s32.totalorder %s643_s25, 0 }
 0x185   : > { %p650_p1 = scmp.ge.s32.totalorder %s463_s15, 2  ;;  %s250_s7 = scalar_lea.sflag [#allocation4], %s249_s6 }
 0x187   : > { %p330_p3 = pnand %p650_p1, %p649_p13 }
 0x189   : > { %p331_p5 = pneg %p330_p3 }
 0x18b   : > { %446 = dma.done.wait (%p331_p5), %s250_s7, 128  }
 0x18c   : > { %448 = vsyncadd (%p331_p5), %s250_s7, 4294967168  ;;  %p16_p8 = scmp.ge.s32.totalorder %s512_s18, 4   ;;  %s651_s12 = smov %s455_s13 }
 0x18d   : > { %s652_s13 = smov %s459_s14  ;;  %s653_s14 = smov %s524_s21 }
 0x18e   : > { %s654_s15 = smov %s512_s18  ;;  %18 = sbr.rel (!%p16_p8) target bundleno = 5 (0x5), region = 77 }
 0x193   :  { %255 = vsyncpa [#allocation3], 1 }
 0x194   :  { %257 = vsyncpa [#allocation3 + $0x1], 1 }
 0x195   :  { %258 = vsyncpa [#allocation4], 1 }
 0x196   :  { %260 = vsyncpa [#allocation4 + $0x1], 1 }

</bundles_post_ra>
